<compile_context>
chip_gen: v7x
topology: tpu7x:2x2x1
jax: 0.10.0
libtpu: 0.0.40
codegen_flags: <defaults>
</compile_context>

<pallas_src>
import functools
from typing import NamedTuple

import jax
import jax.numpy as jnp
from jax.experimental import pallas as pl
from jax.experimental.pallas import tpu as pltpu


def _round_up(x, m):
    return ((x + m - 1) // m) * m


class HeadMeta(NamedTuple):
    layer_num: int
    input_dim: int
    hidden_dim: int
    output_dim: int
    in_p: int       # padded input dim (lanes)
    hid_p: int      # padded hidden dim (lanes)
    out_w: int      # padded fused output width (lanes)
    split: int      # lane where log_std starts inside the fused output


# --------------------------------------------------------------------------
# Kernel
# --------------------------------------------------------------------------
def _head_kernel(layer_num, log_std_min, log_std_max, split, *refs):
    # refs = [obs, (W_i, b_i) * layer_num, W_head, b_head, out]
    obs_ref = refs[0]
    hidden_refs = refs[1:1 + 2 * layer_num]
    wh_ref, bh_ref = refs[1 + 2 * layer_num:3 + 2 * layer_num]
    out_ref = refs[3 + 2 * layer_num]

    x = obs_ref[...]                                     # (TILE_B, IN_P) bf16
    for i in range(layer_num):
        w = hidden_refs[2 * i][...]                      # bf16 (prev, HID_P)
        b = hidden_refs[2 * i + 1][...]                  # f32  (1,   HID_P)
        h = jnp.dot(x, w, preferred_element_type=jnp.float32) + b
        x = jnp.maximum(h, 0.0).astype(jnp.bfloat16)     # ReLU f32, cast for MXU

    # Fused mean|log_std projection: (TILE_B, OUT_W), f32 accumulate.
    fused = jnp.dot(x, wh_ref[...], preferred_element_type=jnp.float32) + bh_ref[...]

    if split % 128 == 0:
        # Wide head: split is tile-aligned -> free slice views, clamp only the
        # log_std half (no iota, no select, no wasted clip on the mean lanes).
        out_ref[:, :split] = fused[:, :split].astype(out_ref.dtype)
        out_ref[:, split:] = jnp.clip(
            fused[:, split:], log_std_min, log_std_max).astype(out_ref.dtype)
    else:
        # Packed head (single 128-lane tile): clamp lanes >= split.  Padding
        # lanes also get clamped but are sliced off outside the kernel.
        lane = jax.lax.broadcasted_iota(jnp.int32, (1, fused.shape[1]), 1)
        clipped = jnp.clip(fused, log_std_min, log_std_max)
        out_ref[...] = jnp.where(lane >= split, clipped, fused).astype(out_ref.dtype)


# --------------------------------------------------------------------------
# One-time parameter preparation (hoisted out of the per-step hot path)
# --------------------------------------------------------------------------
def prepare_params(params, *, layer_num):
    """Pad / cast weights once.  Returns (padded_pytree, HeadMeta)."""
    input_dim = params["hidden"][0][0].shape[0]
    hidden_dim = params["hidden"][0][0].shape[1]
    output_dim = params["mean"][0].shape[1]

    in_p = _round_up(input_dim, 128)
    hid_p = _round_up(hidden_dim, 128)
    if 2 * output_dim <= 128:
        split = output_dim          # pack mean+log_std into a single 128-lane tile
        out_w = 128
    else:
        split = _round_up(output_dim, 128)
        out_w = 2 * split

    padded = {"hidden": []}
    prev_raw, prev_pad = input_dim, in_p
    for (w, b) in params["hidden"]:
        w_p = jnp.pad(w.astype(jnp.bfloat16),
                      ((0, prev_pad - prev_raw), (0, hid_p - hidden_dim)))
        b_p = jnp.pad(b.reshape(1, -1).astype(jnp.float32),
                      ((0, 0), (0, hid_p - hidden_dim)))
        padded["hidden"].append((w_p, b_p))
        prev_raw, prev_pad = hidden_dim, hid_p

    # Fuse mean + log_std projections into one weight / bias.
    wm, bm = params["mean"]
    ws, bs = params["log_std"]
    w_head = jnp.zeros((hid_p, out_w), jnp.bfloat16)
    w_head = w_head.at[:hidden_dim, :output_dim].set(wm.astype(jnp.bfloat16))
    w_head = w_head.at[:hidden_dim, split:split + output_dim].set(
        ws.astype(jnp.bfloat16))
    b_head = jnp.zeros((1, out_w), jnp.float32)
    b_head = b_head.at[:, :output_dim].set(bm.reshape(1, -1).astype(jnp.float32))
    b_head = b_head.at[:, split:split + output_dim].set(
        bs.reshape(1, -1).astype(jnp.float32))
    padded["head"] = (w_head, b_head)

    meta = HeadMeta(layer_num=layer_num, input_dim=input_dim,
                    hidden_dim=hidden_dim, output_dim=output_dim,
                    in_p=in_p, hid_p=hid_p, out_w=out_w, split=split)
    return padded, meta


def _pick_tile_b(batch, tile_b_max):
    """Batch tile: big enough to amortize per-step overhead, >=2 grid steps for
    batches > 256 (so v7x's two TensorCores both get work), 256-aligned when large."""
    b8 = _round_up(batch, 8)
    if b8 <= 256:
        return b8
    half = -(-b8 // 2)  # cdiv(b8, 2)
    if half >= 256:
        return min(max(256, _round_up(tile_b_max, 256)), _round_up(half, 256))
    return _round_up(half, 8)


def _resident_spec(shape):
    """Weight/bias block: constant index_map keeps it VMEM-resident across grid
    steps; a single buffer (no double-buffering) halves its VMEM footprint."""
    idx = lambda i: (0, 0)
    try:
        return pl.BlockSpec(shape, idx, pipeline_mode=pl.Buffered(1))
    except Exception:   # pragma: no cover - fall back if pipeline_mode unsupported
        return pl.BlockSpec(shape, idx)


# --------------------------------------------------------------------------
# Forward
# --------------------------------------------------------------------------
@functools.partial(jax.jit,
                   static_argnames=("meta", "log_std_min", "log_std_max", "tile_b"))
def sac_gaussian_mlp_head_forward(obs, padded, *, meta,
                                  log_std_min=-20.0, log_std_max=2.0,
                                  tile_b=1024):
    """Returns (mean, log_std), each (B, output_dim) float32."""
    B = obs.shape[0]
    tile_B = _pick_tile_b(B, int(tile_b))
    b_p = _round_up(B, tile_B)

    # Single fused pad + cast of obs (no extra zero buffer / second pass).
    obs_p = jnp.pad(obs.astype(jnp.bfloat16),
                    ((0, b_p - B), (0, meta.in_p - meta.input_dim)))

    inputs = [obs_p]
    in_specs = [pl.BlockSpec((tile_B, meta.in_p), lambda i: (i, 0))]

    prev = meta.in_p
    for (w_p, bias_p) in padded["hidden"]:
        inputs += [w_p, bias_p]
        in_specs += [_resident_spec((prev, meta.hid_p)),
                     _resident_spec((1, meta.hid_p))]
        prev = meta.hid_p

    w_head, b_head = padded["head"]
    inputs += [w_head, b_head]
    in_specs += [_resident_spec((meta.hid_p, meta.out_w)),
                 _resident_spec((1, meta.out_w))]

    out_shape = jax.ShapeDtypeStruct((b_p, meta.out_w), jnp.float32)
    out_specs = pl.BlockSpec((tile_B, meta.out_w), lambda i: (i, 0))

    kernel = functools.partial(_head_kernel, meta.layer_num,
                               float(log_std_min), float(log_std_max), meta.split)

    fused = pl.pallas_call(
        kernel,
        grid=(b_p // tile_B,),
        in_specs=in_specs,
        out_specs=out_specs,
        out_shape=out_shape,
        compiler_params=pltpu.CompilerParams(
            dimension_semantics=("parallel",)),   # batch splits across v7x's 2 TCs
    )(*inputs)

    mean = fused[:B, :meta.output_dim]
    log_std = fused[:B, meta.split:meta.split + meta.output_dim]
    return mean, log_std


# --------------------------------------------------------------------------
# Init + pure-JAX reference
# --------------------------------------------------------------------------
def init_params(key, input_dim, mlp_hidden_dim, output_dim, layer_num):
    """PyTorch-Linear-style init: U(-1/sqrt(fan_in), 1/sqrt(fan_in))."""
    params = {"hidden": []}

    def linear(key, i_dim, o_dim):
        kw, kb = jax.random.split(key)
        bound = 1.0 / jnp.sqrt(jnp.float32(i_dim))
        w = jax.random.uniform(kw, (i_dim, o_dim), jnp.float32, -bound, bound)
        b = jax.random.uniform(kb, (1, o_dim), jnp.float32, -bound, bound)
        return w, b

    keys = jax.random.split(key, layer_num + 2)
    i_dim = input_dim
    for idx in range(layer_num):
        params["hidden"].append(linear(keys[idx], i_dim, mlp_hidden_dim))
        i_dim = mlp_hidden_dim
    params["mean"] = linear(keys[layer_num], mlp_hidden_dim, output_dim)
    params["log_std"] = linear(keys[layer_num + 1], mlp_hidden_dim, output_dim)
    return params


def reference_forward(obs, params, log_std_min=-20.0, log_std_max=2.0,
                      matmul_dtype=jnp.float32):
    """Pure-JAX reference. matmul_dtype=bf16 mirrors the kernel's MXU operands."""
    x = obs.astype(jnp.float32)
    for (w, b) in params["hidden"]:
        y = jnp.dot(x.astype(matmul_dtype), w.astype(matmul_dtype),
                    preferred_element_type=jnp.float32) + b
        x = jnp.maximum(y, 0.0)
    mean = jnp.dot(x.astype(matmul_dtype), params["mean"][0].astype(matmul_dtype),
                   preferred_element_type=jnp.float32) + params["mean"][1]
    log_std = jnp.dot(x.astype(matmul_dtype), params["log_std"][0].astype(matmul_dtype),
                      preferred_element_type=jnp.float32) + params["log_std"][1]
    log_std = jnp.clip(log_std, log_std_min, log_std_max)
    return mean, log_std


if __name__ == "__main__":
    key = jax.random.PRNGKey(0)
    k_p1, k_p2, k_o1, k_o2, k_o3, k_o4 = jax.random.split(key, 6)

    # ---- Config A: packed head (2*output_dim <= 128 -> single 128-lane tile) ----
    input_dim, mlp_hidden_dim, output_dim, layer_num = 16, 32, 8, 2
    params = init_params(k_p1, input_dim, mlp_hidden_dim, output_dim, layer_num)
    padded, meta = prepare_params(params, layer_num=layer_num)

    # batches: single tile / batch padding / two grid steps (>256)
    for k_o, batch in ((k_o1, 8), (k_o2, 13), (k_o3, 272)):
        obs = jax.random.normal(k_o, (batch, input_dim), jnp.float32)
        mean, log_std = sac_gaussian_mlp_head_forward(obs, padded, meta=meta)
        jax.block_until_ready((mean, log_std))
        assert mean.shape == (batch, output_dim)
        assert log_std.shape == (batch, output_dim)

        # Exact-semantics check vs. a reference using the same bf16 MXU operands.
        ref_m, ref_s = reference_forward(obs, params, matmul_dtype=jnp.bfloat16)
        assert jnp.allclose(mean, ref_m, atol=1e-3, rtol=1e-3)
        assert jnp.allclose(log_std, ref_s, atol=1e-3, rtol=1e-3)

        # Sanity check vs. full-f32 module semantics (bf16 quantization noise only).
        ref_m32, ref_s32 = reference_forward(obs, params)
        assert jnp.allclose(mean, ref_m32, atol=5e-2, rtol=5e-2)
        assert jnp.allclose(log_std, ref_s32, atol=5e-2, rtol=5e-2)

    # ---- Config B: wide head (2*output_dim > 128 -> aligned slice-write epilogue) ----
    in_b, hid_b, out_b, ln_b = 16, 32, 72, 1
    params_b = init_params(k_p2, in_b, hid_b, out_b, ln_b)
    padded_b, meta_b = prepare_params(params_b, layer_num=ln_b)
    obs_b = jax.random.normal(k_o4, (8, in_b), jnp.float32)
    mean_b, log_std_b = sac_gaussian_mlp_head_forward(obs_b, padded_b, meta=meta_b)
    jax.block_until_ready((mean_b, log_std_b))
    assert mean_b.shape == (8, out_b) and log_std_b.shape == (8, out_b)
    ref_mb, ref_sb = reference_forward(obs_b, params_b, matmul_dtype=jnp.bfloat16)
    assert jnp.allclose(mean_b, ref_mb, atol=1e-3, rtol=1e-3)
    assert jnp.allclose(log_std_b, ref_sb, atol=1e-3, rtol=1e-3)

    # TODO(synk): evaluate() (Normal sampling, tanh squash, log_prob) is left
    # outside the kernel; only forward() semantics are implemented here.
    print("KERNEL_OK")
</pallas_src>

<mosaic_0001>
module attributes {stable_mosaic.version = 11 : i64} {
  func.func @_head_kernel(%arg0: i32, %arg1: memref<8x128xbf16, #tpu.memory_space<vmem>>, %arg2: memref<128x128xbf16, #tpu.memory_space<vmem>>, %arg3: memref<1x128xf32, #tpu.memory_space<vmem>>, %arg4: memref<128x128xbf16, #tpu.memory_space<vmem>>, %arg5: memref<1x128xf32, #tpu.memory_space<vmem>>, %arg6: memref<128x128xbf16, #tpu.memory_space<vmem>>, %arg7: memref<1x128xf32, #tpu.memory_space<vmem>>, %arg8: memref<8x128xf32, #tpu.memory_space<vmem>>) attributes {dimension_semantics = [#tpu.dimension_semantics<parallel>], iteration_bounds = array<i64: 1>, scalar_prefetch = 0 : i64, scratch_operands = 0 : i64, tpu.core_type = #tpu.core_type<tc>, window_params = [{transform_indices = @transform_0, window_bounds = array<i64: 8, 128>}, {pipeline_mode = #tpu.pipeline_mode<synchronous>, transform_indices = @transform_1, window_bounds = array<i64: 128, 128>}, {pipeline_mode = #tpu.pipeline_mode<synchronous>, transform_indices = @transform_2, window_bounds = array<i64: 1, 128>}, {pipeline_mode = #tpu.pipeline_mode<synchronous>, transform_indices = @transform_3, window_bounds = array<i64: 128, 128>}, {pipeline_mode = #tpu.pipeline_mode<synchronous>, transform_indices = @transform_4, window_bounds = array<i64: 1, 128>}, {pipeline_mode = #tpu.pipeline_mode<synchronous>, transform_indices = @transform_5, window_bounds = array<i64: 128, 128>}, {pipeline_mode = #tpu.pipeline_mode<synchronous>, transform_indices = @transform_6, window_bounds = array<i64: 1, 128>}, {transform_indices = @transform_7, window_bounds = array<i64: 8, 128>}]} {
    %c0 = arith.constant 0 : index
    %c0_0 = arith.constant 0 : index
    %0 = vector.load %arg1[%c0, %c0_0] : memref<8x128xbf16, #tpu.memory_space<vmem>>, vector<8x128xbf16>
    %c0_1 = arith.constant 0 : index
    %c0_2 = arith.constant 0 : index
    %1 = vector.load %arg2[%c0_1, %c0_2] : memref<128x128xbf16, #tpu.memory_space<vmem>>, vector<128x128xbf16>
    %c0_3 = arith.constant 0 : index
    %c0_4 = arith.constant 0 : index
    %2 = vector.load %arg3[%c0_3, %c0_4] : memref<1x128xf32, #tpu.memory_space<vmem>>, vector<1x128xf32>
    %cst = arith.constant dense<0.000000e+00> : vector<8x128xf32>
    %3 = tpu.matmul %0, %1, %cst {dimension_numbers = #tpu.dot_dimension_numbers<[1], [0], [0], [1], [0, 0, 1, 1], [], []>} : vector<8x128xbf16>, vector<128x128xbf16>, vector<8x128xf32> -> vector<8x128xf32>
    %4 = vector.broadcast %2 : vector<1x128xf32> to vector<8x128xf32>
    %5 = arith.addf %3, %4 : vector<8x128xf32>
    %cst_5 = arith.constant 0.000000e+00 : f32
    %6 = vector.broadcast %cst_5 : f32 to vector<8x128xf32>
    %7 = arith.maximumf %5, %6 : vector<8x128xf32>
    %8 = arith.truncf %7 : vector<8x128xf32> to vector<8x128xbf16>
    %c0_6 = arith.constant 0 : index
    %c0_7 = arith.constant 0 : index
    %9 = vector.load %arg4[%c0_6, %c0_7] : memref<128x128xbf16, #tpu.memory_space<vmem>>, vector<128x128xbf16>
    %c0_8 = arith.constant 0 : index
    %c0_9 = arith.constant 0 : index
    %10 = vector.load %arg5[%c0_8, %c0_9] : memref<1x128xf32, #tpu.memory_space<vmem>>, vector<1x128xf32>
    %cst_10 = arith.constant dense<0.000000e+00> : vector<8x128xf32>
    %11 = tpu.matmul %8, %9, %cst_10 {dimension_numbers = #tpu.dot_dimension_numbers<[1], [0], [0], [1], [0, 0, 1, 1], [], []>} : vector<8x128xbf16>, vector<128x128xbf16>, vector<8x128xf32> -> vector<8x128xf32>
    %12 = vector.broadcast %10 : vector<1x128xf32> to vector<8x128xf32>
    %13 = arith.addf %11, %12 : vector<8x128xf32>
    %cst_11 = arith.constant 0.000000e+00 : f32
    %14 = vector.broadcast %cst_11 : f32 to vector<8x128xf32>
    %15 = arith.maximumf %13, %14 : vector<8x128xf32>
    %16 = arith.truncf %15 : vector<8x128xf32> to vector<8x128xbf16>
    %c0_12 = arith.constant 0 : index
    %c0_13 = arith.constant 0 : index
    %17 = vector.load %arg6[%c0_12, %c0_13] : memref<128x128xbf16, #tpu.memory_space<vmem>>, vector<128x128xbf16>
    %cst_14 = arith.constant dense<0.000000e+00> : vector<8x128xf32>
    %18 = tpu.matmul %16, %17, %cst_14 {dimension_numbers = #tpu.dot_dimension_numbers<[1], [0], [0], [1], [0, 0, 1, 1], [], []>} : vector<8x128xbf16>, vector<128x128xbf16>, vector<8x128xf32> -> vector<8x128xf32>
    %c0_15 = arith.constant 0 : index
    %c0_16 = arith.constant 0 : index
    %19 = vector.load %arg7[%c0_15, %c0_16] : memref<1x128xf32, #tpu.memory_space<vmem>>, vector<1x128xf32>
    %20 = vector.broadcast %19 : vector<1x128xf32> to vector<8x128xf32>
    %21 = arith.addf %18, %20 : vector<8x128xf32>
    %22 = tpu.iota {dimensions = array<i32: 1>} : vector<1x128xi32>
    %cst_17 = arith.constant -2.000000e+01 : f32
    %cst_18 = arith.constant 2.000000e+00 : f32
    %23 = vector.broadcast %cst_17 : f32 to vector<8x128xf32>
    %24 = arith.maximumf %23, %21 : vector<8x128xf32>
    %25 = vector.broadcast %cst_18 : f32 to vector<8x128xf32>
    %26 = arith.minimumf %25, %24 : vector<8x128xf32>
    %c8_i32 = arith.constant 8 : i32
    %27 = vector.broadcast %c8_i32 : i32 to vector<1x128xi32>
    %28 = arith.cmpi sge, %22, %27 : vector<1x128xi32>
    %29 = vector.shape_cast %28 : vector<1x128xi1> to vector<1x128xi1>
    %30 = vector.broadcast %29 : vector<1x128xi1> to vector<8x128xi1>
    %31 = arith.select %30, %26, %21 : vector<8x128xi1>, vector<8x128xf32>
    %c0_19 = arith.constant 0 : index
    %c0_20 = arith.constant 0 : index
    %32 = vector.load %arg8[%c0_19, %c0_20] : memref<8x128xf32, #tpu.memory_space<vmem>>, vector<8x128xf32>
    tpu.vector_store %arg8[%c0_19, %c0_20], %31 {strides = array<i32>} : memref<8x128xf32, #tpu.memory_space<vmem>>, vector<8x128xf32>,
    return
  }
  func.func @transform_0(%arg0: i32) -> (i32, i32) {
    %c0_i32 = arith.constant 0 : i32
    %c0_i32_0 = arith.constant 0 : i32
    return %arg0, %c0_i32 : i32, i32
  }
  func.func @transform_1(%arg0: i32) -> (i32, i32) {
    %c0_i32 = arith.constant 0 : i32
    %c0_i32_0 = arith.constant 0 : i32
    %c0_i32_1 = arith.constant 0 : i32
    return %c0_i32, %c0_i32_0 : i32, i32
  }
  func.func @transform_2(%arg0: i32) -> (i32, i32) {
    %c0_i32 = arith.constant 0 : i32
    %c0_i32_0 = arith.constant 0 : i32
    %c0_i32_1 = arith.constant 0 : i32
    return %c0_i32, %c0_i32_0 : i32, i32
  }
  func.func @transform_3(%arg0: i32) -> (i32, i32) {
    %c0_i32 = arith.constant 0 : i32
    %c0_i32_0 = arith.constant 0 : i32
    %c0_i32_1 = arith.constant 0 : i32
    return %c0_i32, %c0_i32_0 : i32, i32
  }
  func.func @transform_4(%arg0: i32) -> (i32, i32) {
    %c0_i32 = arith.constant 0 : i32
    %c0_i32_0 = arith.constant 0 : i32
    %c0_i32_1 = arith.constant 0 : i32
    return %c0_i32, %c0_i32_0 : i32, i32
  }
  func.func @transform_5(%arg0: i32) -> (i32, i32) {
    %c0_i32 = arith.constant 0 : i32
    %c0_i32_0 = arith.constant 0 : i32
    %c0_i32_1 = arith.constant 0 : i32
    return %c0_i32, %c0_i32_0 : i32, i32
  }
  func.func @transform_6(%arg0: i32) -> (i32, i32) {
    %c0_i32 = arith.constant 0 : i32
    %c0_i32_0 = arith.constant 0 : i32
    %c0_i32_1 = arith.constant 0 : i32
    return %c0_i32, %c0_i32_0 : i32, i32
  }
  func.func @transform_7(%arg0: i32) -> (i32, i32) {
    %c0_i32 = arith.constant 0 : i32
    %c0_i32_0 = arith.constant 0 : i32
    return %arg0, %c0_i32 : i32, i32
  }
}

</mosaic_0001>

<bundles_post_ra>
// kernel: sac_gaussian_mlp_head_forward.1
= control target key start
LH: loop header
LB: loop body
LE: loop exit
PB: predicated region body
PF: predicated region fallthrough
CT: control target
= control target key end

     0   :  { %12 = vsyncpa [#allocation3], 0  ;;  %s780_s0 = inlined_call_operand.vmem [shape: bf16[8,128], index: 0, kind: input, shape index: {}]   ;;  %s781_s1 = inlined_call_operand.hbm [shape: bf16[128,128], index: 1, kind: input, shape index: {}]   ;;  %s782_s2 = inlined_call_operand.vmem [shape: f32[1,128], index: 2, kind: input, shape index: {}]   ;;  %s783_s3 = inlined_call_operand.hbm [shape: bf16[128,128], index: 3, kind: input, shape index: {}]   ;;  %s784_s4 = inlined_call_operand.vmem [shape: f32[1,128], index: 4, kind: input, shape index: {}]   ;;  %s785_s5 = inlined_call_operand.hbm [shape: bf16[128,128], index: 5, kind: input, shape index: {}]   ;;  %s786_s6 = inlined_call_operand.vmem [shape: f32[1,128], index: 6, kind: input, shape index: {}]   ;;  %s787_s7 = inlined_call_operand.vmem [shape: f32[8,128], index: 7, kind: output, shape index: {}]  }
   0x1   :  { %13 = vsyncpa [#allocation5], 0  ;;  %s636_s24 = smov [#allocation4]   ;;  %s637_s26 = smov [#allocation2]  }
   0x2   :  { %s35_s25 = sshll.u32 %s636_s24, 4  ;;  %s21_s27 = sshll.u32 %s637_s26, 4  ;;  %s36_s25 = int_to_ptr.vmem [resolvable:$true] %s35_s25  ;;  %s683_s27 = int_to_ptr.vmem [resolvable:$true] %s21_s27 }
   0x3   :  { %s566_s30 = scalar_lea.hbm %s783_s3, 1024 }
   0x4   :  { %p567_p0 = scmp.ne.s32.totalorder %s783_s3, %s566_s30  ;;  %p570_p1 = scmp.lt.u32.totalorder %s566_s30, %s783_s3 }
   0x6   :  { %p572_p2 = pnand %p570_p1, %p567_p0 }
   0x8   :  { %575 = shalt.err (!%p572_p2)
}
   0x9   :  { %s576_s12 = scalar_lea.vmem %s36_s25, 1024  ;;  %p581_p4 = scmp.lt.s32.totalorder %s36_s25, %s36_s25 }
   0xa   :  { %p577_p3 = scmp.ne.s32.totalorder %s36_s25, %s576_s12  ;;  %p582_p5 = scmp.lt.s32.totalorder %s576_s12, %s576_s12 }
   0xc   :  { %p583_p6 = por %p582_p5, %p581_p4 }
   0xe   :  { %p584_p7 = pnand %p583_p6, %p577_p3 }
  0x10   :  { %587 = shalt.err (!%p584_p7)
}
  0x11   :  { %s638_s13 = smov 64   ;;  %s639_s14 = smov 4  }
  0x12   :  { %41 = dma.hbm_to_vmem [thread:$0]  %s783_s3, 1024, %s36_s25, [#allocation5], %s638_s13, %s638_s13, %s639_s14  }
  0x13   :  { %s588_s19 = scalar_lea.hbm %s781_s1, 1024 }
  0x14   :  { %p589_p8 = scmp.ne.s32.totalorder %s781_s1, %s588_s19  ;;  %p592_p9 = scmp.lt.u32.totalorder %s588_s19, %s781_s1 }
  0x16   :  { %p594_p10 = pnand %p592_p9, %p589_p8 }
  0x18   :  { %597 = shalt.err (!%p594_p10)
}
  0x19   :  { %s598_s24 = scalar_lea.vmem %s683_s27, 1024  ;;  %p603_p12 = scmp.lt.s32.totalorder %s683_s27, %s683_s27 }
  0x1a   :  { %p599_p11 = scmp.ne.s32.totalorder %s683_s27, %s598_s24  ;;  %p604_p13 = scmp.lt.s32.totalorder %s598_s24, %s598_s24 }
  0x1c   :  { %p605_p0 = por %p604_p13, %p603_p12 }
  0x1e   :  { %p606_p1 = pnand %p605_p0, %p599_p11 }
  0x20   :  { %609 = shalt.err (!%p606_p1)
}
  0x21   :  { %27 = dma.hbm_to_vmem [thread:$0]  %s781_s1, 1024, %s683_s27, [#allocation3], %s638_s13, %s638_s13, %s639_s14  }
  0x22   :  { %s640_s26 = smov [#allocation6]   ;;  %s610_s8 = scalar_lea.hbm %s785_s5, 1024 }
  0x23   :  { %s49_s28 = sshll.u32 %s640_s26, 4  ;;  %p611_p2 = scmp.ne.s32.totalorder %s785_s5, %s610_s8  ;;  %s50_s28 = int_to_ptr.vmem [resolvable:$true] %s49_s28 }
  0x24   :  { %p614_p3 = scmp.lt.u32.totalorder %s610_s8, %s785_s5 }
  0x26   :  { %p616_p4 = pnand %p614_p3, %p611_p2 }
  0x28   :  { %619 = shalt.err (!%p616_p4)
}
  0x29   :  { %s620_s15 = scalar_lea.vmem %s50_s28, 1024  ;;  %p625_p6 = scmp.lt.s32.totalorder %s50_s28, %s50_s28 }
  0x2a   :  { %p621_p5 = scmp.ne.s32.totalorder %s50_s28, %s620_s15  ;;  %p626_p7 = scmp.lt.s32.totalorder %s620_s15, %s620_s15 }
  0x2c   :  { %p627_p8 = por %p626_p7, %p625_p6 }
  0x2e   :  { %p628_p9 = pnand %p627_p8, %p621_p5 }
  0x30   :  { %631 = shalt.err (!%p628_p9)
}
  0x31   :  { %55 = dma.hbm_to_vmem [thread:$0]  %s785_s5, 1024, %s50_s28, [#allocation5], %s638_s13, %s638_s13, %s639_s14  }
  0x32   :  { %632 = dma.done.wait [#allocation3], 1024  }
  0x33   :  { %633 = vsyncadd [#allocation3], 4294966272 }
  0x34   :  { %634 = dma.done.wait [#allocation5], 2048  }
  0x35   :  { %635 = vsyncadd [#allocation5], 4294965248  ;;  %v641_v0 = vmov 0.0   ;;  %vm642_vm0 = vmmov 0   ;;  %v542_v1 = vld [vmem:[#allocation2] sm:$0xff]   ;;  %v543_v2 = vld [vmem:[#allocation2 + $0x8] sm:$0xff]   ;;  %v406_v42 = vlaneseq }
  0x36   :  { %475 = vmatprep.subr.bf16.mxu0 %v641_v0  ;;  %491 = vmatprep.mubr.msk.bf16.mxu0 %vm642_vm0, %v641_v0  ;;  %v544_v3 = vld [vmem:[#allocation2 + $0x10] sm:$0xff]   ;;  %v550_v4 = vld [vmem:[#allocation4] sm:$0xff]   ;;  %v545_v5 = vld [vmem:[#allocation2 + $0x18] sm:$0xff]  }
  0x37   :  { %495 = vmatprep.subr.bf16.mxu1 %v641_v0  ;;  %511 = vmatprep.mubr.msk.bf16.mxu1 %vm642_vm0, %v641_v0  ;;  %v551_v6 = vld [vmem:[#allocation4 + $0x8] sm:$0xff]   ;;  %v546_v7 = vld [vmem:[#allocation2 + $0x20] sm:$0xff]   ;;  %v552_v8 = vld [vmem:[#allocation4 + $0x10] sm:$0xff]   ;;  %v407_v45 = vand.u32 127, %v406_v42 }
  0x38   :  { %476 = vmatpush3.bf16.msra.mxu0 %v542_v1  ;;  %496 = vmatpush3.bf16.msra.mxu1 %v550_v4  ;;  %v547_v9 = vld [vmem:[#allocation2 + $0x28] sm:$0xff]   ;;  %v553_v10 = vld [vmem:[#allocation4 + $0x18] sm:$0xff]   ;;  %v548_v11 = vld [vmem:[#allocation2 + $0x30] sm:$0xff]  }
  0x39   :  { %477 = vmatprep.subr.bf16.mxu0 %v641_v0  ;;  %497 = vmatprep.subr.bf16.mxu1 %v641_v0  ;;  %v554_v12 = vld [vmem:[#allocation4 + $0x20] sm:$0xff]   ;;  %v549_v13 = vld [vmem:[#allocation2 + $0x38] sm:$0xff]   ;;  %v555_v14 = vld [vmem:[#allocation4 + $0x28] sm:$0xff]   ;;  %vm410_vm1 = vcmp.ge.s32.totalorder %v407_v45, 8 }
  0x3a   :  { %v68_v15 = vld [vmem:[%s780_s0] sm:$0xf]  ;;  %v557_v17 = vld [vmem:[#allocation4 + $0x38] sm:$0xff]   ;;  %v558_v18 = vld [vmem:[#allocation6] sm:$0xff]  }
  0x3b   :  { %v556_v16 = vld [vmem:[#allocation4 + $0x30] sm:$0xff]   ;;  %v559_v19 = vld [vmem:[#allocation6 + $0x8] sm:$0xff]   ;;  %v561_v21 = vld [vmem:[#allocation6 + $0x18] sm:$0xff]  }
  0x3c   :  { %478 = vmatpush3.bf16.msra.mxu0 %v543_v2  ;;  %498 = vmatpush3.bf16.msra.mxu1 %v551_v6  ;;  %v560_v20 = vld [vmem:[#allocation6 + $0x10] sm:$0xff]   ;;  %v562_v22 = vld [vmem:[#allocation6 + $0x20] sm:$0xff]   ;;  %v563_v23 = vld [vmem:[#allocation6 + $0x28] sm:$0xff]  }
  0x3d   :  { %479 = vmatprep.subr.bf16.mxu0 %v641_v0  ;;  %499 = vmatprep.subr.bf16.mxu1 %v641_v0  ;;  %v421_v24 = vld [vmem:[%s782_s2] ss:$0 sm:$0xff]  ;;  %v565_v33 = vld [vmem:[#allocation6 + $0x38] sm:$0xff]  }
  0x3e   :  { %v564_v32 = vld [vmem:[#allocation6 + $0x30] sm:$0xff]  }
  0x3f   :  { %v430_v34 = vld [vmem:[%s784_s4] ss:$0 sm:$0xff] }
  0x40   :  { %480 = vmatpush3.bf16.msra.mxu0 %v544_v3  ;;  %500 = vmatpush3.bf16.msra.mxu1 %v552_v8  ;;  %v439_v43 = vld [vmem:[%s786_s6] ss:$0 sm:$0xff] }
  0x41   :  { %481 = vmatprep.subr.bf16.mxu0 %v641_v0  ;;  %501 = vmatprep.subr.bf16.mxu1 %v641_v0 }
  0x44   :  { %482 = vmatpush3.bf16.msra.mxu0 %v545_v5  ;;  %502 = vmatpush3.bf16.msra.mxu1 %v553_v10 }
  0x45   :  { %483 = vmatprep.subr.bf16.mxu0 %v641_v0  ;;  %503 = vmatprep.subr.bf16.mxu1 %v641_v0 }
  0x48   :  { %484 = vmatpush3.bf16.msra.mxu0 %v546_v7  ;;  %504 = vmatpush3.bf16.msra.mxu1 %v554_v12 }
  0x49   :  { %485 = vmatprep.subr.bf16.mxu0 %v641_v0  ;;  %505 = vmatprep.subr.bf16.mxu1 %v641_v0 }
  0x4c   :  { %486 = vmatpush3.bf16.msra.mxu0 %v547_v9  ;;  %506 = vmatpush3.bf16.msra.mxu1 %v555_v14 }
  0x4d   :  { %487 = vmatprep.subr.bf16.mxu0 %v641_v0  ;;  %507 = vmatprep.subr.bf16.mxu1 %v641_v0 }
  0x50   :  { %488 = vmatpush3.bf16.msra.mxu0 %v548_v11  ;;  %508 = vmatpush3.bf16.msra.mxu1 %v556_v16 }
  0x51   :  { %489 = vmatprep.subr.bf16.mxu0 %v641_v0  ;;  %509 = vmatprep.subr.bf16.mxu1 %v641_v0 }
  0x54   :  { %490 = vmatpush3.bf16.msra.mxu0 %v549_v13  ;;  %510 = vmatpush3.bf16.msra.mxu1 %v557_v17 }
  0x55   :  { %515 = vmatprep.subr.bf16.mxu0 %v641_v0 }
  0x57   :  { %492 = vmatmul.mubr.bf16.vlgmr.msra.gmra.mrb[0].mxu0 %v68_v15 }
  0x58   :  { %531 = vmatprep.mubr.msk.bf16.mxu0 %vm642_vm0, %v641_v0  ;;  %516 = vmatpush3.bf16.msra.mxu0 %v558_v18 }
  0x59   :  { %517 = vmatprep.subr.bf16.mxu0 %v641_v0 }
  0x5c   :  { %518 = vmatpush3.bf16.msra.mxu0 %v559_v19 }
  0x5d   :  { %519 = vmatprep.subr.bf16.mxu0 %v641_v0 }
  0x60   :  { %520 = vmatpush3.bf16.msra.mxu0 %v560_v20 }
  0x61   :  { %521 = vmatprep.subr.bf16.mxu0 %v641_v0 }
  0x64   :  { %522 = vmatpush3.bf16.msra.mxu0 %v561_v21 }
  0x65   :  { %523 = vmatprep.subr.bf16.mxu0 %v641_v0 }
  0x68   :  { %524 = vmatpush3.bf16.msra.mxu0 %v562_v22 }
  0x69   :  { %525 = vmatprep.subr.bf16.mxu0 %v641_v0 }
  0x6c   :  { %526 = vmatpush3.bf16.msra.mxu0 %v563_v23 }
  0x6d   :  { %527 = vmatprep.subr.bf16.mxu0 %v641_v0 }
  0x70   :  { %528 = vmatpush3.bf16.msra.mxu0 %v564_v32 }
  0x71   :  { %529 = vmatprep.subr.bf16.mxu0 %v641_v0 }
  0x74   :  { %530 = vmatpush3.bf16.msra.mxu0 %v565_v33 }
 0x12a   :  { %v174_v25 = vpop.f32.mrb[0].mxu0 }
 0x12b   :  { %v175_v26 = vadd.f32 %v421_v24, %v174_v25  ;;  %v493_v27 = vpop.f32.mrb[1].mxu0 }
 0x12c   :  { %v177_v28 = vpop.f32.mrb[2].mxu0 }
 0x12d   :  { %v180_v29 = vmax.f32 %v175_v26, 0.0  ;;  %v494_v30 = vpop.f32.mrb[3].mxu0 }
 0x12f   :  { %v181_v31 = vpack.c.bf16 %v180_v29, %v180_v29 }
 0x131   :  { %512 = vmatmul.mubr.bf16.vlgmr.msra.gmra.mrb[0].mxu1 %v181_v31 }
 0x204   :  { %v287_v35 = vpop.f32.mrb[0].mxu1 }
 0x205   :  { %v288_v36 = vadd.f32 %v430_v34, %v287_v35  ;;  %v513_v37 = vpop.f32.mrb[1].mxu1 }
 0x206   :  { %v290_v38 = vpop.f32.mrb[2].mxu1 }
 0x207   :  { %v293_v39 = vmax.f32 %v288_v36, 0.0  ;;  %v514_v40 = vpop.f32.mrb[3].mxu1 }
 0x209   :  { %v294_v41 = vpack.c.bf16 %v293_v39, %v293_v39 }
 0x20b   :  { %532 = vmatmul.mubr.bf16.vlgmr.msra.gmra.mrb[4].mxu0 %v294_v41 }
 0x2de   :  { %v400_v44 = vpop.f32.mrb[4].mxu0 }
 0x2df   :  { %v401_v46 = vadd.f32 %v439_v43, %v400_v44  ;;  %v533_v47 = vpop.f32.mrb[5].mxu0 }
 0x2e0   :  { %v403_v48 = vpop.f32.mrb[6].mxu0 }
 0x2e1   :  { %v408_v49 = vmax.f32 %v401_v46, -20.0  ;;  %v534_v50 = vpop.f32.mrb[7].mxu0 }
 0x2e3   :  { %v409_v51 = vmin.f32 %v408_v49, 2.0 }
 0x2e5   :  { %v413_v52 = vsel %vm410_vm1, %v409_v51, %v401_v46 }
 0x2e6   :  { %414 = vst [vmem:[%s787_s7] sm:$0xff] %v413_v52 }
 0x2e7   :  { %419 = vsyncpa [#allocation3], 1 }
 0x2e8   :  { %420 = vsyncpa [#allocation5], 1 }

</bundles_post_ra>
